<compile_context>
chip_gen: v7x
topology: tpu7x:2x2x1
jax: 0.10.0
libtpu: 0.0.40
codegen_flags: <defaults>
</compile_context>

<pallas_src>
import jax
import jax.numpy as jnp
from jax import lax
from jax.experimental import pallas as pl
from jax.experimental.pallas import tpu as pltpu


# ----------------------------- blocking / layout ------------------------------

def _choose_blocking(N, C, L):
    """Pick sublane packing (G), lane padding (Lp), batch block (Nb) and grid."""
    G = max(1, 8 // C) if C < 8 else 1          # f32: 8 sublanes per vreg
    CG = G * C
    Lp = ((max(L, 1) + 127) // 128) * 128       # lane-dense stores (multiple of 128)
    row_bytes = CG * Lp * 4
    nb_cap = max(1, (1 << 20) // row_bytes)     # ~1 MiB of input per block
    npk = -(-N // G)                            # packed rows = ceil(N / G)
    npk = max(npk, 2)                           # keep grid >= 2 (v7x has 2 TCs)
    nb = min(nb_cap, -(-npk // 2))              # at least 2 grid steps
    grid_len = -(-npk // nb)
    npk_pad = grid_len * nb
    return G, CG, Lp, nb, grid_len, npk_pad


def _vmem_limit_bytes():
    """~half of physical VMEM: 32 MiB on v7x (64 MiB), 64 MiB on v5e/v6e (128 MiB)."""
    try:
        cap = int(pltpu.get_tpu_info().vmem_capacity_bytes)
    except Exception:
        cap = 64 * 1024 * 1024
    return max(32 * 1024 * 1024, min(cap // 2, 96 * 1024 * 1024))


# ------------------------- BN folding + weight packing -------------------------

def _fold_bn_into_conv(conv_w, conv_b, gamma, beta, mean, var, G, eps=1e-5):
    """Fold eval-mode BatchNorm into the conv and pack for the sublane layout.

    Returns:
      w_pack: (3*C, C*G, 1) f32, w_pack[k*C+ci, co*G+g, 0] = w[co, ci, k]*scale[co]
      b_pack: (C*G, 1)      f32, b_pack[co*G+g, 0]        = b[co]*scale[co]+shift[co]
    """
    scale = gamma / jnp.sqrt(var + eps)                            # (C,)
    shift = beta - mean * scale                                    # (C,)
    C = conv_w.shape[0]
    w_eff = conv_w.astype(jnp.float32) * scale[:, None, None]      # (Co, Ci, K)
    b_eff = conv_b.astype(jnp.float32) * scale + shift             # (C,)
    w_kc = jnp.transpose(w_eff, (2, 1, 0)).reshape(3 * C, C)       # [k*C+ci, co]
    w_pack = jnp.repeat(w_kc, G, axis=1)[:, :, None]               # (3C, CG, 1)
    b_pack = jnp.repeat(b_eff, G)[:, None]                         # (CG, 1)
    return w_pack, b_pack


# ------------------------------ JAX wrapper ------------------------------------

def ode_func_forward(t, x_ncl, params):
    """Forward pass of ODEFunc (eval mode). t is ignored, as in the PyTorch module."""
    del t
    N, C, L = x_ncl.shape
    G, CG, Lp, Nb, grid_len, npk_pad = _choose_blocking(N, C, L)
    N_pad = npk_pad * G

    w1, b1 = _fold_bn_into_conv(params["conv1_w"], params["conv1_b"],
                                params["bn1_gamma"], params["bn1_beta"],
                                params["bn1_mean"], params["bn1_var"], G)
    w2, b2 = _fold_bn_into_conv(params["conv2_w"], params["conv2_b"],
                                params["bn2_gamma"], params["bn2_beta"],
                                params["bn2_mean"], params["bn2_var"], G)

    # Zero-pad batch (grid/packing) and L (lane-dense), then fold G batch elements
    # into the sublane axis: sublane index = ci*G + g.
    # NOTE: f32 HBM I/O kept for bit-accuracy vs the reference; bf16 streaming would
    # halve HBM traffic on this mem-bound kernel at ~1e-3 relative error.
    x = x_ncl.astype(jnp.float32)
    x = jnp.pad(x, ((0, N_pad - N), (0, 0), (0, Lp - L)))
    x_p = x.reshape(npk_pad, G, C, Lp).transpose(0, 2, 1, 3).reshape(npk_pad, CG, Lp)

    def kernel(x_ref, w1_ref, b1_ref, w2_ref, b2_ref, o_ref):
        x_blk = x_ref[...]                                           # (Nb, CG, Lp)
        lane = lax.broadcasted_iota(jnp.int32, (1, 1, Lp), 2)
        at_l0 = lane == 0                                            # conv left pad
        at_lL = lane == (L - 1)                                      # conv right pad

        def conv3(v, w_ref_, b_ref_):
            """3-tap 'same' conv along lanes, vectorized over output channels."""
            W = w_ref_[...]                                          # (3C, CG, 1)
            b = b_ref_[...]                                          # (CG, 1)
            # +-1 shifts on the XLU; boundary lanes forced to the conv zero-pad,
            # which also keeps the padded lane region from leaking into real lanes.
            x_m1 = jnp.where(at_l0, 0.0, pltpu.roll(v, 1, 2))        # x[l-1]
            x_p1 = jnp.where(at_lL, 0.0, pltpu.roll(v, Lp - 1, 2))   # x[l+1]
            taps = (x_m1, v, x_p1)
            acc = jnp.broadcast_to(b[None, :, :], v.shape)           # bias-column init
            for k in range(3):
                xk = taps[k]
                for ci in range(C):
                    sel = xk[:, ci * G:(ci + 1) * G, :]              # (Nb, G, Lp)
                    tap = jnp.tile(sel, (1, C, 1))                   # (Nb, CG, Lp)
                    acc = acc + W[k * C + ci] * tap                  # (CG,1) broadcast
            return acc

        h = conv3(x_blk, w1_ref, b1_ref)                             # conv1 + bn1
        h = jnp.maximum(h, 0.0)                                      # relu
        dx = conv3(h, w2_ref, b2_ref)                                # conv2 + bn2
        # TODO(synk): training-mode Dropout (stochastic mask via pltpu.prng_random_bits)
        # not implemented; eval-mode dropout is the identity, which is what we emit.
        o_ref[...] = dx.astype(o_ref.dtype)

    out_p = pl.pallas_call(
        kernel,
        out_shape=jax.ShapeDtypeStruct((npk_pad, CG, Lp), jnp.float32),
        grid=(grid_len,),
        in_specs=[
            pl.BlockSpec((Nb, CG, Lp), lambda n: (n, 0, 0)),     # x: batch-blocked
            pl.BlockSpec((3 * C, CG, 1), lambda n: (0, 0, 0)),   # w1 (resident VMEM)
            pl.BlockSpec((CG, 1), lambda n: (0, 0)),             # b1
            pl.BlockSpec((3 * C, CG, 1), lambda n: (0, 0, 0)),   # w2
            pl.BlockSpec((CG, 1), lambda n: (0, 0)),             # b2
        ],
        out_specs=pl.BlockSpec((Nb, CG, Lp), lambda n: (n, 0, 0)),
        compiler_params=pltpu.CompilerParams(
            dimension_semantics=("parallel",),                    # shards across TCs
            vmem_limit_bytes=_vmem_limit_bytes(),
        ),
    )(x_p, w1, b1, w2, b2)

    # Unpack sublanes back to (N, C, L) and crop the batch / lane padding.
    out = out_p.reshape(npk_pad, C, G, Lp).transpose(0, 2, 1, 3).reshape(N_pad, C, Lp)
    return out[:N, :, :L]


# -------------------------- deterministic params -------------------------------

def init_params(key, C):
    ks = jax.random.split(key, 12)
    bound = 1.0 / jnp.sqrt(jnp.float32(C * 3))  # PyTorch conv default init bound
    return {
        "conv1_w": jax.random.uniform(ks[0], (C, C, 3), jnp.float32, -bound, bound),
        "conv1_b": jax.random.uniform(ks[1], (C,), jnp.float32, -bound, bound),
        "conv2_w": jax.random.uniform(ks[2], (C, C, 3), jnp.float32, -bound, bound),
        "conv2_b": jax.random.uniform(ks[3], (C,), jnp.float32, -bound, bound),
        "bn1_gamma": 1.0 + 0.1 * jax.random.normal(ks[4], (C,), jnp.float32),
        "bn1_beta": 0.1 * jax.random.normal(ks[5], (C,), jnp.float32),
        "bn1_mean": 0.1 * jax.random.normal(ks[6], (C,), jnp.float32),
        "bn1_var": 1.0 + 0.1 * jnp.abs(jax.random.normal(ks[7], (C,), jnp.float32)),
        "bn2_gamma": 1.0 + 0.1 * jax.random.normal(ks[8], (C,), jnp.float32),
        "bn2_beta": 0.1 * jax.random.normal(ks[9], (C,), jnp.float32),
        "bn2_mean": 0.1 * jax.random.normal(ks[10], (C,), jnp.float32),
        "bn2_var": 1.0 + 0.1 * jnp.abs(jax.random.normal(ks[11], (C,), jnp.float32)),
    }


# ---------------------------- pure-JAX reference --------------------------------

def ref_forward(x_ncl, params, eps=1e-5):
    def conv1d(v, w, b):
        y = jax.lax.conv_general_dilated(
            v, w, window_strides=(1,), padding=((1, 1),),
            dimension_numbers=("NCH", "OIH", "NCH"))
        return y + b[None, :, None]

    def bn(v, g, b, m, var):
        return (v - m[None, :, None]) / jnp.sqrt(var + eps)[None, :, None] \
            * g[None, :, None] + b[None, :, None]

    h = conv1d(x_ncl, params["conv1_w"], params["conv1_b"])
    h = bn(h, params["bn1_gamma"], params["bn1_beta"],
           params["bn1_mean"], params["bn1_var"])
    h = jnp.maximum(h, 0.0)
    h = conv1d(h, params["conv2_w"], params["conv2_b"])
    h = bn(h, params["bn2_gamma"], params["bn2_beta"],
           params["bn2_mean"], params["bn2_var"])
    return h  # eval-mode dropout is identity


# ----------------------------------- main ----------------------------------------

if __name__ == "__main__":
    key = jax.random.PRNGKey(0)
    kx, kp = jax.random.split(key)

    N, C, L = 2, 4, 16                 # x: (batch, channels, seq) as in Conv1d
    x = jax.random.normal(kx, (N, C, L), jnp.float32)
    params = init_params(kp, C)
    t = jnp.float32(0.0)

    out = jax.block_until_ready(ode_func_forward(t, x, params))
    ref = ref_forward(x, params)

    assert out.shape == (N, C, L), out.shape
    if not jnp.allclose(out, ref, atol=1e-4, rtol=1e-4):
        raise AssertionError(
            f"mismatch vs reference, max err = {jnp.max(jnp.abs(out - ref))}")

    print("KERNEL_OK")
</pallas_src>

<mosaic_0001>
module attributes {stable_mosaic.version = 11 : i64} {
  func.func @kernel(%arg0: i32, %arg1: memref<1x8x128xf32, #tpu.memory_space<vmem>>, %arg2: memref<12x8x1xf32, #tpu.memory_space<vmem>>, %arg3: memref<8x1xf32, #tpu.memory_space<vmem>>, %arg4: memref<12x8x1xf32, #tpu.memory_space<vmem>>, %arg5: memref<8x1xf32, #tpu.memory_space<vmem>>, %arg6: memref<1x8x128xf32, #tpu.memory_space<vmem>>) attributes {dimension_semantics = [#tpu.dimension_semantics<parallel>], iteration_bounds = array<i64: 2>, scalar_prefetch = 0 : i64, scratch_operands = 0 : i64, tpu.core_type = #tpu.core_type<tc>, window_params = [{transform_indices = @transform_0, window_bounds = array<i64: 1, 8, 128>}, {pipeline_mode = #tpu.pipeline_mode<synchronous>, transform_indices = @transform_1, window_bounds = array<i64: 12, 8, 1>}, {pipeline_mode = #tpu.pipeline_mode<synchronous>, transform_indices = @transform_2, window_bounds = array<i64: 8, 1>}, {pipeline_mode = #tpu.pipeline_mode<synchronous>, transform_indices = @transform_3, window_bounds = array<i64: 12, 8, 1>}, {pipeline_mode = #tpu.pipeline_mode<synchronous>, transform_indices = @transform_4, window_bounds = array<i64: 8, 1>}, {transform_indices = @transform_5, window_bounds = array<i64: 1, 8, 128>}]} {
    %c0 = arith.constant 0 : index
    %c0_0 = arith.constant 0 : index
    %c0_1 = arith.constant 0 : index
    %0 = vector.load %arg1[%c0, %c0_0, %c0_1] : memref<1x8x128xf32, #tpu.memory_space<vmem>>, vector<1x8x128xf32>
    %1 = tpu.iota {dimensions = array<i32: 2>} : vector<1x1x128xi32>
    %c0_i32 = arith.constant 0 : i32
    %2 = vector.broadcast %c0_i32 : i32 to vector<1x1x128xi32>
    %3 = arith.cmpi eq, %1, %2 : vector<1x1x128xi32>
    %c15_i32 = arith.constant 15 : i32
    %4 = vector.broadcast %c15_i32 : i32 to vector<1x1x128xi32>
    %5 = arith.cmpi eq, %1, %4 : vector<1x1x128xi32>
    %c0_2 = arith.constant 0 : index
    %c0_3 = arith.constant 0 : index
    %c0_4 = arith.constant 0 : index
    %6 = vector.load %arg2[%c0_2, %c0_3, %c0_4] : memref<12x8x1xf32, #tpu.memory_space<vmem>>, vector<12x8x1xf32>
    %c0_5 = arith.constant 0 : index
    %c0_6 = arith.constant 0 : index
    %7 = vector.load %arg3[%c0_5, %c0_6] : memref<8x1xf32, #tpu.memory_space<vmem>>, vector<8x1xf32>
    %c1_i32 = arith.constant 1 : i32
    %8 = tpu.dynamic_rotate %0 by %c1_i32 dim 2 : vector<1x8x128xf32>, i32 -> vector<1x8x128xf32>
    %cst = arith.constant 0.000000e+00 : f32
    %9 = vector.shape_cast %3 : vector<1x1x128xi1> to vector<1x1x128xi1>
    %10 = vector.broadcast %9 : vector<1x1x128xi1> to vector<1x8x128xi1>
    %11 = vector.broadcast %cst : f32 to vector<1x8x128xf32>
    %12 = arith.select %10, %11, %8 : vector<1x8x128xi1>, vector<1x8x128xf32>
    %c127_i32 = arith.constant 127 : i32
    %13 = tpu.dynamic_rotate %0 by %c127_i32 dim 2 : vector<1x8x128xf32>, i32 -> vector<1x8x128xf32>
    %cst_7 = arith.constant 0.000000e+00 : f32
    %14 = vector.shape_cast %5 : vector<1x1x128xi1> to vector<1x1x128xi1>
    %15 = vector.broadcast %14 : vector<1x1x128xi1> to vector<1x8x128xi1>
    %16 = vector.broadcast %cst_7 : f32 to vector<1x8x128xf32>
    %17 = arith.select %15, %16, %13 : vector<1x8x128xi1>, vector<1x8x128xf32>
    %18 = vector.shape_cast %7 : vector<8x1xf32> to vector<1x8x1xf32>
    %19 = vector.shape_cast %18 : vector<1x8x1xf32> to vector<1x8x1xf32>
    %20 = vector.broadcast %19 : vector<1x8x1xf32> to vector<1x8x128xf32>
    %21 = vector.extract_strided_slice %12 {offsets = [0, 0, 0], sizes = [1, 2, 128], strides = [1, 1, 1]} : vector<1x8x128xf32> to vector<1x2x128xf32>
    %22 = tpu.concatenate %21, %21, %21, %21 in 1 : vector<1x2x128xf32>, vector<1x2x128xf32>, vector<1x2x128xf32>, vector<1x2x128xf32> -> vector<1x8x128xf32>
    %23 = vector.extract_strided_slice %6 {offsets = [0, 0, 0], sizes = [1, 8, 1], strides = [1, 1, 1]} : vector<12x8x1xf32> to vector<1x8x1xf32>
    %24 = vector.shape_cast %23 : vector<1x8x1xf32> to vector<8x1xf32>
    %25 = vector.shape_cast %24 : vector<8x1xf32> to vector<1x8x1xf32>
    %26 = vector.broadcast %25 : vector<1x8x1xf32> to vector<1x8x128xf32>
    %27 = arith.mulf %26, %22 : vector<1x8x128xf32>
    %28 = arith.addf %20, %27 : vector<1x8x128xf32>
    %29 = vector.extract_strided_slice %12 {offsets = [0, 2, 0], sizes = [1, 2, 128], strides = [1, 1, 1]} : vector<1x8x128xf32> to vector<1x2x128xf32>
    %30 = tpu.concatenate %29, %29, %29, %29 in 1 : vector<1x2x128xf32>, vector<1x2x128xf32>, vector<1x2x128xf32>, vector<1x2x128xf32> -> vector<1x8x128xf32>
    %31 = vector.extract_strided_slice %6 {offsets = [1, 0, 0], sizes = [1, 8, 1], strides = [1, 1, 1]} : vector<12x8x1xf32> to vector<1x8x1xf32>
    %32 = vector.shape_cast %31 : vector<1x8x1xf32> to vector<8x1xf32>
    %33 = vector.shape_cast %32 : vector<8x1xf32> to vector<1x8x1xf32>
    %34 = vector.broadcast %33 : vector<1x8x1xf32> to vector<1x8x128xf32>
    %35 = arith.mulf %34, %30 : vector<1x8x128xf32>
    %36 = arith.addf %28, %35 : vector<1x8x128xf32>
    %37 = vector.extract_strided_slice %12 {offsets = [0, 4, 0], sizes = [1, 2, 128], strides = [1, 1, 1]} : vector<1x8x128xf32> to vector<1x2x128xf32>
    %38 = tpu.concatenate %37, %37, %37, %37 in 1 : vector<1x2x128xf32>, vector<1x2x128xf32>, vector<1x2x128xf32>, vector<1x2x128xf32> -> vector<1x8x128xf32>
    %39 = vector.extract_strided_slice %6 {offsets = [2, 0, 0], sizes = [1, 8, 1], strides = [1, 1, 1]} : vector<12x8x1xf32> to vector<1x8x1xf32>
    %40 = vector.shape_cast %39 : vector<1x8x1xf32> to vector<8x1xf32>
    %41 = vector.shape_cast %40 : vector<8x1xf32> to vector<1x8x1xf32>
    %42 = vector.broadcast %41 : vector<1x8x1xf32> to vector<1x8x128xf32>
    %43 = arith.mulf %42, %38 : vector<1x8x128xf32>
    %44 = arith.addf %36, %43 : vector<1x8x128xf32>
    %45 = vector.extract_strided_slice %12 {offsets = [0, 6, 0], sizes = [1, 2, 128], strides = [1, 1, 1]} : vector<1x8x128xf32> to vector<1x2x128xf32>
    %46 = tpu.concatenate %45, %45, %45, %45 in 1 : vector<1x2x128xf32>, vector<1x2x128xf32>, vector<1x2x128xf32>, vector<1x2x128xf32> -> vector<1x8x128xf32>
    %47 = vector.extract_strided_slice %6 {offsets = [3, 0, 0], sizes = [1, 8, 1], strides = [1, 1, 1]} : vector<12x8x1xf32> to vector<1x8x1xf32>
    %48 = vector.shape_cast %47 : vector<1x8x1xf32> to vector<8x1xf32>
    %49 = vector.shape_cast %48 : vector<8x1xf32> to vector<1x8x1xf32>
    %50 = vector.broadcast %49 : vector<1x8x1xf32> to vector<1x8x128xf32>
    %51 = arith.mulf %50, %46 : vector<1x8x128xf32>
    %52 = arith.addf %44, %51 : vector<1x8x128xf32>
    %53 = vector.extract_strided_slice %0 {offsets = [0, 0, 0], sizes = [1, 2, 128], strides = [1, 1, 1]} : vector<1x8x128xf32> to vector<1x2x128xf32>
    %54 = tpu.concatenate %53, %53, %53, %53 in 1 : vector<1x2x128xf32>, vector<1x2x128xf32>, vector<1x2x128xf32>, vector<1x2x128xf32> -> vector<1x8x128xf32>
    %55 = vector.extract_strided_slice %6 {offsets = [4, 0, 0], sizes = [1, 8, 1], strides = [1, 1, 1]} : vector<12x8x1xf32> to vector<1x8x1xf32>
    %56 = vector.shape_cast %55 : vector<1x8x1xf32> to vector<8x1xf32>
    %57 = vector.shape_cast %56 : vector<8x1xf32> to vector<1x8x1xf32>
    %58 = vector.broadcast %57 : vector<1x8x1xf32> to vector<1x8x128xf32>
    %59 = arith.mulf %58, %54 : vector<1x8x128xf32>
    %60 = arith.addf %52, %59 : vector<1x8x128xf32>
    %61 = vector.extract_strided_slice %0 {offsets = [0, 2, 0], sizes = [1, 2, 128], strides = [1, 1, 1]} : vector<1x8x128xf32> to vector<1x2x128xf32>
    %62 = tpu.concatenate %61, %61, %61, %61 in 1 : vector<1x2x128xf32>, vector<1x2x128xf32>, vector<1x2x128xf32>, vector<1x2x128xf32> -> vector<1x8x128xf32>
    %63 = vector.extract_strided_slice %6 {offsets = [5, 0, 0], sizes = [1, 8, 1], strides = [1, 1, 1]} : vector<12x8x1xf32> to vector<1x8x1xf32>
    %64 = vector.shape_cast %63 : vector<1x8x1xf32> to vector<8x1xf32>
    %65 = vector.shape_cast %64 : vector<8x1xf32> to vector<1x8x1xf32>
    %66 = vector.broadcast %65 : vector<1x8x1xf32> to vector<1x8x128xf32>
    %67 = arith.mulf %66, %62 : vector<1x8x128xf32>
    %68 = arith.addf %60, %67 : vector<1x8x128xf32>
    %69 = vector.extract_strided_slice %0 {offsets = [0, 4, 0], sizes = [1, 2, 128], strides = [1, 1, 1]} : vector<1x8x128xf32> to vector<1x2x128xf32>
    %70 = tpu.concatenate %69, %69, %69, %69 in 1 : vector<1x2x128xf32>, vector<1x2x128xf32>, vector<1x2x128xf32>, vector<1x2x128xf32> -> vector<1x8x128xf32>
    %71 = vector.extract_strided_slice %6 {offsets = [6, 0, 0], sizes = [1, 8, 1], strides = [1, 1, 1]} : vector<12x8x1xf32> to vector<1x8x1xf32>
    %72 = vector.shape_cast %71 : vector<1x8x1xf32> to vector<8x1xf32>
    %73 = vector.shape_cast %72 : vector<8x1xf32> to vector<1x8x1xf32>
    %74 = vector.broadcast %73 : vector<1x8x1xf32> to vector<1x8x128xf32>
    %75 = arith.mulf %74, %70 : vector<1x8x128xf32>
    %76 = arith.addf %68, %75 : vector<1x8x128xf32>
    %77 = vector.extract_strided_slice %0 {offsets = [0, 6, 0], sizes = [1, 2, 128], strides = [1, 1, 1]} : vector<1x8x128xf32> to vector<1x2x128xf32>
    %78 = tpu.concatenate %77, %77, %77, %77 in 1 : vector<1x2x128xf32>, vector<1x2x128xf32>, vector<1x2x128xf32>, vector<1x2x128xf32> -> vector<1x8x128xf32>
    %79 = vector.extract_strided_slice %6 {offsets = [7, 0, 0], sizes = [1, 8, 1], strides = [1, 1, 1]} : vector<12x8x1xf32> to vector<1x8x1xf32>
    %80 = vector.shape_cast %79 : vector<1x8x1xf32> to vector<8x1xf32>
    %81 = vector.shape_cast %80 : vector<8x1xf32> to vector<1x8x1xf32>
    %82 = vector.broadcast %81 : vector<1x8x1xf32> to vector<1x8x128xf32>
    %83 = arith.mulf %82, %78 : vector<1x8x128xf32>
    %84 = arith.addf %76, %83 : vector<1x8x128xf32>
    %85 = vector.extract_strided_slice %17 {offsets = [0, 0, 0], sizes = [1, 2, 128], strides = [1, 1, 1]} : vector<1x8x128xf32> to vector<1x2x128xf32>
    %86 = tpu.concatenate %85, %85, %85, %85 in 1 : vector<1x2x128xf32>, vector<1x2x128xf32>, vector<1x2x128xf32>, vector<1x2x128xf32> -> vector<1x8x128xf32>
    %87 = vector.extract_strided_slice %6 {offsets = [8, 0, 0], sizes = [1, 8, 1], strides = [1, 1, 1]} : vector<12x8x1xf32> to vector<1x8x1xf32>
    %88 = vector.shape_cast %87 : vector<1x8x1xf32> to vector<8x1xf32>
    %89 = vector.shape_cast %88 : vector<8x1xf32> to vector<1x8x1xf32>
    %90 = vector.broadcast %89 : vector<1x8x1xf32> to vector<1x8x128xf32>
    %91 = arith.mulf %90, %86 : vector<1x8x128xf32>
    %92 = arith.addf %84, %91 : vector<1x8x128xf32>
    %93 = vector.extract_strided_slice %17 {offsets = [0, 2, 0], sizes = [1, 2, 128], strides = [1, 1, 1]} : vector<1x8x128xf32> to vector<1x2x128xf32>
    %94 = tpu.concatenate %93, %93, %93, %93 in 1 : vector<1x2x128xf32>, vector<1x2x128xf32>, vector<1x2x128xf32>, vector<1x2x128xf32> -> vector<1x8x128xf32>
    %95 = vector.extract_strided_slice %6 {offsets = [9, 0, 0], sizes = [1, 8, 1], strides = [1, 1, 1]} : vector<12x8x1xf32> to vector<1x8x1xf32>
    %96 = vector.shape_cast %95 : vector<1x8x1xf32> to vector<8x1xf32>
    %97 = vector.shape_cast %96 : vector<8x1xf32> to vector<1x8x1xf32>
    %98 = vector.broadcast %97 : vector<1x8x1xf32> to vector<1x8x128xf32>
    %99 = arith.mulf %98, %94 : vector<1x8x128xf32>
    %100 = arith.addf %92, %99 : vector<1x8x128xf32>
    %101 = vector.extract_strided_slice %17 {offsets = [0, 4, 0], sizes = [1, 2, 128], strides = [1, 1, 1]} : vector<1x8x128xf32> to vector<1x2x128xf32>
    %102 = tpu.concatenate %101, %101, %101, %101 in 1 : vector<1x2x128xf32>, vector<1x2x128xf32>, vector<1x2x128xf32>, vector<1x2x128xf32> -> vector<1x8x128xf32>
    %103 = vector.extract_strided_slice %6 {offsets = [10, 0, 0], sizes = [1, 8, 1], strides = [1, 1, 1]} : vector<12x8x1xf32> to vector<1x8x1xf32>
    %104 = vector.shape_cast %103 : vector<1x8x1xf32> to vector<8x1xf32>
    %105 = vector.shape_cast %104 : vector<8x1xf32> to vector<1x8x1xf32>
    %106 = vector.broadcast %105 : vector<1x8x1xf32> to vector<1x8x128xf32>
    %107 = arith.mulf %106, %102 : vector<1x8x128xf32>
    %108 = arith.addf %100, %107 : vector<1x8x128xf32>
    %109 = vector.extract_strided_slice %17 {offsets = [0, 6, 0], sizes = [1, 2, 128], strides = [1, 1, 1]} : vector<1x8x128xf32> to vector<1x2x128xf32>
    %110 = tpu.concatenate %109, %109, %109, %109 in 1 : vector<1x2x128xf32>, vector<1x2x128xf32>, vector<1x2x128xf32>, vector<1x2x128xf32> -> vector<1x8x128xf32>
    %111 = vector.extract_strided_slice %6 {offsets = [11, 0, 0], sizes = [1, 8, 1], strides = [1, 1, 1]} : vector<12x8x1xf32> to vector<1x8x1xf32>
    %112 = vector.shape_cast %111 : vector<1x8x1xf32> to vector<8x1xf32>
    %113 = vector.shape_cast %112 : vector<8x1xf32> to vector<1x8x1xf32>
    %114 = vector.broadcast %113 : vector<1x8x1xf32> to vector<1x8x128xf32>
    %115 = arith.mulf %114, %110 : vector<1x8x128xf32>
    %116 = arith.addf %108, %115 : vector<1x8x128xf32>
    %cst_8 = arith.constant 0.000000e+00 : f32
    %117 = vector.broadcast %cst_8 : f32 to vector<1x8x128xf32>
    %118 = arith.maximumf %116, %117 : vector<1x8x128xf32>
    %c0_9 = arith.constant 0 : index
    %c0_10 = arith.constant 0 : index
    %c0_11 = arith.constant 0 : index
    %119 = vector.load %arg4[%c0_9, %c0_10, %c0_11] : memref<12x8x1xf32, #tpu.memory_space<vmem>>, vector<12x8x1xf32>
    %c0_12 = arith.constant 0 : index
    %c0_13 = arith.constant 0 : index
    %120 = vector.load %arg5[%c0_12, %c0_13] : memref<8x1xf32, #tpu.memory_space<vmem>>, vector<8x1xf32>
    %c1_i32_14 = arith.constant 1 : i32
    %121 = tpu.dynamic_rotate %118 by %c1_i32_14 dim 2 : vector<1x8x128xf32>, i32 -> vector<1x8x128xf32>
    %cst_15 = arith.constant 0.000000e+00 : f32
    %122 = vector.shape_cast %3 : vector<1x1x128xi1> to vector<1x1x128xi1>
    %123 = vector.broadcast %122 : vector<1x1x128xi1> to vector<1x8x128xi1>
    %124 = vector.broadcast %cst_15 : f32 to vector<1x8x128xf32>
    %125 = arith.select %123, %124, %121 : vector<1x8x128xi1>, vector<1x8x128xf32>
    %c127_i32_16 = arith.constant 127 : i32
    %126 = tpu.dynamic_rotate %118 by %c127_i32_16 dim 2 : vector<1x8x128xf32>, i32 -> vector<1x8x128xf32>
    %cst_17 = arith.constant 0.000000e+00 : f32
    %127 = vector.shape_cast %5 : vector<1x1x128xi1> to vector<1x1x128xi1>
    %128 = vector.broadcast %127 : vector<1x1x128xi1> to vector<1x8x128xi1>
    %129 = vector.broadcast %cst_17 : f32 to vector<1x8x128xf32>
    %130 = arith.select %128, %129, %126 : vector<1x8x128xi1>, vector<1x8x128xf32>
    %131 = vector.shape_cast %120 : vector<8x1xf32> to vector<1x8x1xf32>
    %132 = vector.shape_cast %131 : vector<1x8x1xf32> to vector<1x8x1xf32>
    %133 = vector.broadcast %132 : vector<1x8x1xf32> to vector<1x8x128xf32>
    %134 = vector.extract_strided_slice %125 {offsets = [0, 0, 0], sizes = [1, 2, 128], strides = [1, 1, 1]} : vector<1x8x128xf32> to vector<1x2x128xf32>
    %135 = tpu.concatenate %134, %134, %134, %134 in 1 : vector<1x2x128xf32>, vector<1x2x128xf32>, vector<1x2x128xf32>, vector<1x2x128xf32> -> vector<1x8x128xf32>
    %136 = vector.extract_strided_slice %119 {offsets = [0, 0, 0], sizes = [1, 8, 1], strides = [1, 1, 1]} : vector<12x8x1xf32> to vector<1x8x1xf32>
    %137 = vector.shape_cast %136 : vector<1x8x1xf32> to vector<8x1xf32>
    %138 = vector.shape_cast %137 : vector<8x1xf32> to vector<1x8x1xf32>
    %139 = vector.broadcast %138 : vector<1x8x1xf32> to vector<1x8x128xf32>
    %140 = arith.mulf %139, %135 : vector<1x8x128xf32>
    %141 = arith.addf %133, %140 : vector<1x8x128xf32>
    %142 = vector.extract_strided_slice %125 {offsets = [0, 2, 0], sizes = [1, 2, 128], strides = [1, 1, 1]} : vector<1x8x128xf32> to vector<1x2x128xf32>
    %143 = tpu.concatenate %142, %142, %142, %142 in 1 : vector<1x2x128xf32>, vector<1x2x128xf32>, vector<1x2x128xf32>, vector<1x2x128xf32> -> vector<1x8x128xf32>
    %144 = vector.extract_strided_slice %119 {offsets = [1, 0, 0], sizes = [1, 8, 1], strides = [1, 1, 1]} : vector<12x8x1xf32> to vector<1x8x1xf32>
    %145 = vector.shape_cast %144 : vector<1x8x1xf32> to vector<8x1xf32>
    %146 = vector.shape_cast %145 : vector<8x1xf32> to vector<1x8x1xf32>
    %147 = vector.broadcast %146 : vector<1x8x1xf32> to vector<1x8x128xf32>
    %148 = arith.mulf %147, %143 : vector<1x8x128xf32>
    %149 = arith.addf %141, %148 : vector<1x8x128xf32>
    %150 = vector.extract_strided_slice %125 {offsets = [0, 4, 0], sizes = [1, 2, 128], strides = [1, 1, 1]} : vector<1x8x128xf32> to vector<1x2x128xf32>
    %151 = tpu.concatenate %150, %150, %150, %150 in 1 : vector<1x2x128xf32>, vector<1x2x128xf32>, vector<1x2x128xf32>, vector<1x2x128xf32> -> vector<1x8x128xf32>
    %152 = vector.extract_strided_slice %119 {offsets = [2, 0, 0], sizes = [1, 8, 1], strides = [1, 1, 1]} : vector<12x8x1xf32> to vector<1x8x1xf32>
    %153 = vector.shape_cast %152 : vector<1x8x1xf32> to vector<8x1xf32>
    %154 = vector.shape_cast %153 : vector<8x1xf32> to vector<1x8x1xf32>
    %155 = vector.broadcast %154 : vector<1x8x1xf32> to vector<1x8x128xf32>
    %156 = arith.mulf %155, %151 : vector<1x8x128xf32>
    %157 = arith.addf %149, %156 : vector<1x8x128xf32>
    %158 = vector.extract_strided_slice %125 {offsets = [0, 6, 0], sizes = [1, 2, 128], strides = [1, 1, 1]} : vector<1x8x128xf32> to vector<1x2x128xf32>
    %159 = tpu.concatenate %158, %158, %158, %158 in 1 : vector<1x2x128xf32>, vector<1x2x128xf32>, vector<1x2x128xf32>, vector<1x2x128xf32> -> vector<1x8x128xf32>
    %160 = vector.extract_strided_slice %119 {offsets = [3, 0, 0], sizes = [1, 8, 1], strides = [1, 1, 1]} : vector<12x8x1xf32> to vector<1x8x1xf32>
    %161 = vector.shape_cast %160 : vector<1x8x1xf32> to vector<8x1xf32>
    %162 = vector.shape_cast %161 : vector<8x1xf32> to vector<1x8x1xf32>
    %163 = vector.broadcast %162 : vector<1x8x1xf32> to vector<1x8x128xf32>
    %164 = arith.mulf %163, %159 : vector<1x8x128xf32>
    %165 = arith.addf %157, %164 : vector<1x8x128xf32>
    %166 = vector.extract_strided_slice %118 {offsets = [0, 0, 0], sizes = [1, 2, 128], strides = [1, 1, 1]} : vector<1x8x128xf32> to vector<1x2x128xf32>
    %167 = tpu.concatenate %166, %166, %166, %166 in 1 : vector<1x2x128xf32>, vector<1x2x128xf32>, vector<1x2x128xf32>, vector<1x2x128xf32> -> vector<1x8x128xf32>
    %168 = vector.extract_strided_slice %119 {offsets = [4, 0, 0], sizes = [1, 8, 1], strides = [1, 1, 1]} : vector<12x8x1xf32> to vector<1x8x1xf32>
    %169 = vector.shape_cast %168 : vector<1x8x1xf32> to vector<8x1xf32>
    %170 = vector.shape_cast %169 : vector<8x1xf32> to vector<1x8x1xf32>
    %171 = vector.broadcast %170 : vector<1x8x1xf32> to vector<1x8x128xf32>
    %172 = arith.mulf %171, %167 : vector<1x8x128xf32>
    %173 = arith.addf %165, %172 : vector<1x8x128xf32>
    %174 = vector.extract_strided_slice %118 {offsets = [0, 2, 0], sizes = [1, 2, 128], strides = [1, 1, 1]} : vector<1x8x128xf32> to vector<1x2x128xf32>
    %175 = tpu.concatenate %174, %174, %174, %174 in 1 : vector<1x2x128xf32>, vector<1x2x128xf32>, vector<1x2x128xf32>, vector<1x2x128xf32> -> vector<1x8x128xf32>
    %176 = vector.extract_strided_slice %119 {offsets = [5, 0, 0], sizes = [1, 8, 1], strides = [1, 1, 1]} : vector<12x8x1xf32> to vector<1x8x1xf32>
    %177 = vector.shape_cast %176 : vector<1x8x1xf32> to vector<8x1xf32>
    %178 = vector.shape_cast %177 : vector<8x1xf32> to vector<1x8x1xf32>
    %179 = vector.broadcast %178 : vector<1x8x1xf32> to vector<1x8x128xf32>
    %180 = arith.mulf %179, %175 : vector<1x8x128xf32>
    %181 = arith.addf %173, %180 : vector<1x8x128xf32>
    %182 = vector.extract_strided_slice %118 {offsets = [0, 4, 0], sizes = [1, 2, 128], strides = [1, 1, 1]} : vector<1x8x128xf32> to vector<1x2x128xf32>
    %183 = tpu.concatenate %182, %182, %182, %182 in 1 : vector<1x2x128xf32>, vector<1x2x128xf32>, vector<1x2x128xf32>, vector<1x2x128xf32> -> vector<1x8x128xf32>
    %184 = vector.extract_strided_slice %119 {offsets = [6, 0, 0], sizes = [1, 8, 1], strides = [1, 1, 1]} : vector<12x8x1xf32> to vector<1x8x1xf32>
    %185 = vector.shape_cast %184 : vector<1x8x1xf32> to vector<8x1xf32>
    %186 = vector.shape_cast %185 : vector<8x1xf32> to vector<1x8x1xf32>
    %187 = vector.broadcast %186 : vector<1x8x1xf32> to vector<1x8x128xf32>
    %188 = arith.mulf %187, %183 : vector<1x8x128xf32>
    %189 = arith.addf %181, %188 : vector<1x8x128xf32>
    %190 = vector.extract_strided_slice %118 {offsets = [0, 6, 0], sizes = [1, 2, 128], strides = [1, 1, 1]} : vector<1x8x128xf32> to vector<1x2x128xf32>
    %191 = tpu.concatenate %190, %190, %190, %190 in 1 : vector<1x2x128xf32>, vector<1x2x128xf32>, vector<1x2x128xf32>, vector<1x2x128xf32> -> vector<1x8x128xf32>
    %192 = vector.extract_strided_slice %119 {offsets = [7, 0, 0], sizes = [1, 8, 1], strides = [1, 1, 1]} : vector<12x8x1xf32> to vector<1x8x1xf32>
    %193 = vector.shape_cast %192 : vector<1x8x1xf32> to vector<8x1xf32>
    %194 = vector.shape_cast %193 : vector<8x1xf32> to vector<1x8x1xf32>
    %195 = vector.broadcast %194 : vector<1x8x1xf32> to vector<1x8x128xf32>
    %196 = arith.mulf %195, %191 : vector<1x8x128xf32>
    %197 = arith.addf %189, %196 : vector<1x8x128xf32>
    %198 = vector.extract_strided_slice %130 {offsets = [0, 0, 0], sizes = [1, 2, 128], strides = [1, 1, 1]} : vector<1x8x128xf32> to vector<1x2x128xf32>
    %199 = tpu.concatenate %198, %198, %198, %198 in 1 : vector<1x2x128xf32>, vector<1x2x128xf32>, vector<1x2x128xf32>, vector<1x2x128xf32> -> vector<1x8x128xf32>
    %200 = vector.extract_strided_slice %119 {offsets = [8, 0, 0], sizes = [1, 8, 1], strides = [1, 1, 1]} : vector<12x8x1xf32> to vector<1x8x1xf32>
    %201 = vector.shape_cast %200 : vector<1x8x1xf32> to vector<8x1xf32>
    %202 = vector.shape_cast %201 : vector<8x1xf32> to vector<1x8x1xf32>
    %203 = vector.broadcast %202 : vector<1x8x1xf32> to vector<1x8x128xf32>
    %204 = arith.mulf %203, %199 : vector<1x8x128xf32>
    %205 = arith.addf %197, %204 : vector<1x8x128xf32>
    %206 = vector.extract_strided_slice %130 {offsets = [0, 2, 0], sizes = [1, 2, 128], strides = [1, 1, 1]} : vector<1x8x128xf32> to vector<1x2x128xf32>
    %207 = tpu.concatenate %206, %206, %206, %206 in 1 : vector<1x2x128xf32>, vector<1x2x128xf32>, vector<1x2x128xf32>, vector<1x2x128xf32> -> vector<1x8x128xf32>
    %208 = vector.extract_strided_slice %119 {offsets = [9, 0, 0], sizes = [1, 8, 1], strides = [1, 1, 1]} : vector<12x8x1xf32> to vector<1x8x1xf32>
    %209 = vector.shape_cast %208 : vector<1x8x1xf32> to vector<8x1xf32>
    %210 = vector.shape_cast %209 : vector<8x1xf32> to vector<1x8x1xf32>
    %211 = vector.broadcast %210 : vector<1x8x1xf32> to vector<1x8x128xf32>
    %212 = arith.mulf %211, %207 : vector<1x8x128xf32>
    %213 = arith.addf %205, %212 : vector<1x8x128xf32>
    %214 = vector.extract_strided_slice %130 {offsets = [0, 4, 0], sizes = [1, 2, 128], strides = [1, 1, 1]} : vector<1x8x128xf32> to vector<1x2x128xf32>
    %215 = tpu.concatenate %214, %214, %214, %214 in 1 : vector<1x2x128xf32>, vector<1x2x128xf32>, vector<1x2x128xf32>, vector<1x2x128xf32> -> vector<1x8x128xf32>
    %216 = vector.extract_strided_slice %119 {offsets = [10, 0, 0], sizes = [1, 8, 1], strides = [1, 1, 1]} : vector<12x8x1xf32> to vector<1x8x1xf32>
    %217 = vector.shape_cast %216 : vector<1x8x1xf32> to vector<8x1xf32>
    %218 = vector.shape_cast %217 : vector<8x1xf32> to vector<1x8x1xf32>
    %219 = vector.broadcast %218 : vector<1x8x1xf32> to vector<1x8x128xf32>
    %220 = arith.mulf %219, %215 : vector<1x8x128xf32>
    %221 = arith.addf %213, %220 : vector<1x8x128xf32>
    %222 = vector.extract_strided_slice %130 {offsets = [0, 6, 0], sizes = [1, 2, 128], strides = [1, 1, 1]} : vector<1x8x128xf32> to vector<1x2x128xf32>
    %223 = tpu.concatenate %222, %222, %222, %222 in 1 : vector<1x2x128xf32>, vector<1x2x128xf32>, vector<1x2x128xf32>, vector<1x2x128xf32> -> vector<1x8x128xf32>
    %224 = vector.extract_strided_slice %119 {offsets = [11, 0, 0], sizes = [1, 8, 1], strides = [1, 1, 1]} : vector<12x8x1xf32> to vector<1x8x1xf32>
    %225 = vector.shape_cast %224 : vector<1x8x1xf32> to vector<8x1xf32>
    %226 = vector.shape_cast %225 : vector<8x1xf32> to vector<1x8x1xf32>
    %227 = vector.broadcast %226 : vector<1x8x1xf32> to vector<1x8x128xf32>
    %228 = arith.mulf %227, %223 : vector<1x8x128xf32>
    %229 = arith.addf %221, %228 : vector<1x8x128xf32>
    %c0_18 = arith.constant 0 : index
    %c0_19 = arith.constant 0 : index
    %c0_20 = arith.constant 0 : index
    %230 = vector.load %arg6[%c0_18, %c0_19, %c0_20] : memref<1x8x128xf32, #tpu.memory_space<vmem>>, vector<1x8x128xf32>
    tpu.vector_store %arg6[%c0_18, %c0_19, %c0_20], %229 {strides = array<i32>} : memref<1x8x128xf32, #tpu.memory_space<vmem>>, vector<1x8x128xf32>,
    return
  }
  func.func @transform_0(%arg0: i32) -> (i32, i32, i32) {
    %c0_i32 = arith.constant 0 : i32
    %c0_i32_0 = arith.constant 0 : i32
    %c0_i32_1 = arith.constant 0 : i32
    return %arg0, %c0_i32, %c0_i32_0 : i32, i32, i32
  }
  func.func @transform_1(%arg0: i32) -> (i32, i32, i32) {
    %c0_i32 = arith.constant 0 : i32
    %c0_i32_0 = arith.constant 0 : i32
    %c0_i32_1 = arith.constant 0 : i32
    %c0_i32_2 = arith.constant 0 : i32
    return %c0_i32, %c0_i32_0, %c0_i32_1 : i32, i32, i32
  }
  func.func @transform_2(%arg0: i32) -> (i32, i32) {
    %c0_i32 = arith.constant 0 : i32
    %c0_i32_0 = arith.constant 0 : i32
    %c0_i32_1 = arith.constant 0 : i32
    return %c0_i32, %c0_i32_0 : i32, i32
  }
  func.func @transform_3(%arg0: i32) -> (i32, i32, i32) {
    %c0_i32 = arith.constant 0 : i32
    %c0_i32_0 = arith.constant 0 : i32
    %c0_i32_1 = arith.constant 0 : i32
    %c0_i32_2 = arith.constant 0 : i32
    return %c0_i32, %c0_i32_0, %c0_i32_1 : i32, i32, i32
  }
  func.func @transform_4(%arg0: i32) -> (i32, i32) {
    %c0_i32 = arith.constant 0 : i32
    %c0_i32_0 = arith.constant 0 : i32
    %c0_i32_1 = arith.constant 0 : i32
    return %c0_i32, %c0_i32_0 : i32, i32
  }
  func.func @transform_5(%arg0: i32) -> (i32, i32, i32) {
    %c0_i32 = arith.constant 0 : i32
    %c0_i32_0 = arith.constant 0 : i32
    %c0_i32_1 = arith.constant 0 : i32
    return %arg0, %c0_i32, %c0_i32_0 : i32, i32, i32
  }
}

</mosaic_0001>

<bundles_post_ra>
// kernel: tpu_custom_call.1
= control target key start
LH: loop header
LB: loop body
LE: loop exit
PB: predicated region body
PF: predicated region fallthrough
CT: control target
= control target key end

     0   :  { %10 = vsyncpa [#allocation3], 0  ;;  %s1081_s0 = inlined_call_operand.vmem [shape: f32[2,8,128], index: 0, kind: input, shape index: {}]   ;;  %s1082_s1 = inlined_call_operand.vmem [shape: f32[12,8,1], index: 1, kind: input, shape index: {}]   ;;  %s1083_s2 = inlined_call_operand.vmem [shape: f32[8,1], index: 2, kind: input, shape index: {}]   ;;  %s1084_s3 = inlined_call_operand.vmem [shape: f32[12,8,1], index: 3, kind: input, shape index: {}]   ;;  %s1085_s4 = inlined_call_operand.vmem [shape: f32[8,1], index: 4, kind: input, shape index: {}]   ;;  %s1086_s5 = inlined_call_operand.hbm [shape: f32[2,8,128], index: 5, kind: output, shape index: {}]  }
   0x1   :  { %12 = vsyncpa [#allocation3 + $0x1], 0  ;;  %s789_s18 = smov 0   ;;  %s791_s19 = smov 0  }
   0x2   :  { %s793_s20 = smov 0   ;;  %s795_s21 = smov 0  }
   0x3 LB: > { %s810_s22 = sadd.s32 4294967295, %s753_s21   ;;  %s637_s23 = sadd.s32 4294967294, %s753_s21   ;;  %s753_s21 = sphi %s795_s21, %s1092_s21   ;;  %s749_s20 = sphi %s793_s20, %s1091_s20   ;;  %s745_s19 = sphi %s791_s19, %s1090_s19   ;;  %s741_s18 = sphi %s789_s18, %s1089_s18  }
   0x4   : > { %s814_s24 = sadd.s32 1, %s753_s21   ;;  %s135_s25 = sadd.s32 1, %s749_s20 }
   0x5   : > { %s132_s26 = ssub.s32 %s753_s21, %s814_s24  ;;  %p145_p0 = scmp.ne.s32.totalorder %s749_s20, %s745_s19 }
   0x6   : > { %p133_p1 = scmp.eq.s32.totalorder %s132_s26, 0  ;;  %p146_p2 = scmp.eq.s32.totalorder %s810_s22, 1 }
   0x7   : > { %p151_p3 = scmp.ne.s32.totalorder %s745_s19, %s741_s18  ;;  %p152_p4 = scmp.eq.s32.totalorder %s637_s23, 1 }
   0x8   : > { %s825_s27 = scalar_select %p133_p1, %s749_s20, %s135_s25  }
   0x9   : > { %p827_p5 = por %p146_p2, %p145_p0  ;;  %p831_p6 = por %p152_p4, %p151_p3 }
   0xa   : > { %p640_p7 = scmp.ge.s32.totalorder %s753_s21, 1  ;;  %p189_p8 = scmp.lt.s32.totalorder %s753_s21, 3 }
   0xc   : > { %p190_p9 = pnand %p640_p7, %p189_p8 }
   0xd   : > { %v237_v0 = vld [vmem:[%s1083_s2] sm:$0xff] (!%p190_p9)  ;;  %p216_p10 = scmp.lt.s32.totalorder (!%p190_p9), %s810_s22, 1  ;;  %v755_v2 = vmov (!%p190_p9), 0   ;;  %v226_v3 = vld [vmem:[%s1082_s1 + $0x8] sm:$0xff] (!%p190_p9)  ;;  %s756_s16 = smov (!%p190_p9), 1   ;;  %v228_v5 = vld [vmem:[%s1082_s1 + $0x18] sm:$0xff] (!%p190_p9)  ;;  %v221_v24 = vlaneseq (!%p190_p9) }
   0xe   : > { %193 = sbr.rel (%p190_p9) target bundleno = 358 (0x166), region = 40  ;;  %v225_v1 = vld [vmem:[%s1082_s1] sm:$0xff] (!%p190_p9)  ;;  %690 = vset.pattern.permute.xlu1 (!%p190_p9), %v755_v2  ;;  %689 = vset.pattern.permute.xlu0 (!%p190_p9), %v755_v2  ;;  %v227_v6 = vld [vmem:[%s1082_s1 + $0x10] sm:$0xff] (!%p190_p9)  ;;  %v230_v7 = vld [vmem:[%s1082_s1 + $0x28] sm:$0xff] (!%p190_p9)  ;;  %vm260_vm1 = vcmask (!%p190_p9), 1041408   ;;  %vm262_vm2 = vcmask (!%p190_p9), 1043456  }
   0xf   : > { %250 = vperm.xlu1 (!%p190_p9), %690, %v237_v0   ;;  %268 = vperm.xlu0 (!%p190_p9), %689, %v225_v1   ;;  %v229_v8 = vld [vmem:[%s1082_s1 + $0x20] sm:$0xff] (!%p190_p9)  ;;  %v232_v9 = vld [vmem:[%s1082_s1 + $0x38] sm:$0xff] (!%p190_p9)  ;;  %v231_v10 = vld [vmem:[%s1082_s1 + $0x30] sm:$0xff] (!%p190_p9)  ;;  %v914_v25 = vand.u32 (!%p190_p9), 127, %v221_v24  ;;  %vm264_vm3 = vcmask (!%p190_p9), 1045504   ;;  %s644_s30 = sshll.u32 (!%p190_p9), %s810_s22, 7 }
  0x10   : > { %v233_v11 = vld [vmem:[%s1082_s1 + $0x40] sm:$0xff] (!%p190_p9)  ;;  %v235_v12 = vld [vmem:[%s1082_s1 + $0x50] sm:$0xff] (!%p190_p9)  ;;  %v234_v13 = vld [vmem:[%s1082_s1 + $0x48] sm:$0xff] (!%p190_p9)  ;;  %s1037_s10 = scalar_lea.hbm (!%p190_p9), %s1086_s5, %s644_s30 }
  0x11   : > { %v398_v14 = vld [vmem:[%s1084_s3] sm:$0xff] (!%p190_p9)  ;;  %v236_v15 = vld [vmem:[%s1082_s1 + $0x58] sm:$0xff] (!%p190_p9)  ;;  %v399_v17 = vld [vmem:[%s1084_s3 + $0x8] sm:$0xff] (!%p190_p9)  ;;  %vm223_vm0 = vcmp.eq.s32.totalorder (!%p190_p9), %v914_v25, 0  ;;  %vm224_vm4 = vcmp.eq.s32.totalorder (!%p190_p9), %v914_v25, 15 }
  0x12   : > { %v410_v16 = vld [vmem:[%s1085_s4] sm:$0xff] (!%p190_p9)  ;;  %v400_v18 = vld [vmem:[%s1084_s3 + $0x10] sm:$0xff] (!%p190_p9)  ;;  %v407_v22 = vld [vmem:[%s1084_s3 + $0x48] sm:$0xff] (!%p190_p9) }
  0x13   : > { %278 = vperm.xlu1 (!%p190_p9), %690, %v226_v3   ;;  %v402_v19 = vld [vmem:[%s1084_s3 + $0x20] sm:$0xff] (!%p190_p9)  ;;  %v404_v20 = vld [vmem:[%s1084_s3 + $0x30] sm:$0xff] (!%p190_p9)  ;;  %v409_v23 = vld [vmem:[%s1084_s3 + $0x58] sm:$0xff] (!%p190_p9) }
  0x14   : > { %v406_v21 = vld [vmem:[%s1084_s3 + $0x40] sm:$0xff] (!%p190_p9) }
  0x15   : > { %s217_s9 = scalar_select %p216_p10, %s810_s22, 1 }
  0x16   : > { %s758_s22 = smov [#allocation2]  }
  0x17   : > { %s642_s12 = sshll.u32 %s217_s9, 3  ;;  %298 = vperm.xlu1 %690, %v228_v5   ;;  %s695_s13 = sshll.u32 %s758_s22, 4  ;;  %s696_s13 = int_to_ptr.vmem [resolvable:$false] %s695_s13 }
  0x18   : > { %s219_s15 = scalar_lea.vmem %s1081_s0, %s642_s12  ;;  %s697_s14 = scalar_lea.vmem %s696_s13, 256 }
  0x19   : > { %v851_v4 = vld [vmem:[%s219_s15] sm:$0xff]  ;;  %s757_s15 = smov 127  }
  0x1a   : > { %238 = vrot.lane.b32.xlu0 %v851_v4, %s756_s16  ;;  %v304_v34 = vrot.slane %v851_v4, 6  ;;  %v308_v35 = vrot.slane %v851_v4, 2  ;;  %v306_v45 = vrot.slane %v851_v4, 4 }
  0x1b   : > { %325 = vperm.xlu1 %690, %v230_v7  }
  0x1c   : > { %v310_v48 = vsel %vm260_vm1, %v851_v4, %v304_v34  ;;  %v320_v53 = vsel %vm260_vm1, %v308_v35, %v851_v4  ;;  %v330_v59 = vsel %vm260_vm1, %v306_v45, %v308_v35  ;;  %v340_v63 = vsel %vm260_vm1, %v304_v34, %v306_v45 }
  0x1d   : > { %v311_v57 = vsel %vm262_vm2, %v310_v48, %v306_v45  ;;  %v321_v62 = vsel %vm262_vm2, %v320_v53, %v304_v34  ;;  %v408_v53 = vld [vmem:[%s1084_s3 + $0x50] sm:$0xff] }
  0x1e   : > { %288 = vperm.xlu0 %689, %v227_v6   ;;  %v312_v0 = vsel %vm264_vm3, %v311_v57, %v308_v35  ;;  %v331_v6 = vsel %vm262_vm2, %v330_v59, %v851_v4  ;;  %v322_v7 = vsel %vm264_vm3, %v321_v62, %v306_v45 }
  0x1f   : > { %345 = vperm.xlu1 %690, %v232_v9  }
  0x22   : > { %315 = vperm.xlu0 %689, %v229_v8   ;;  %v341_v8 = vsel %vm262_vm2, %v340_v63, %v308_v35 }
  0x23   : > { %243 = vrot.lane.b32.xlu1 %v851_v4, %s757_s15 }
  0x26   : > { %335 = vperm.xlu0 %689, %v231_v10  }
  0x27   : > { %382 = vperm.xlu1 %690, %v235_v12  }
  0x2a   : > { %362 = vperm.xlu0 %689, %v233_v11   ;;  %v332_v11 = vsel %vm264_vm3, %v331_v6, %v304_v34 }
  0x2b   : > { %434 = vperm.xlu1 %690, %v398_v14  }
  0x2e   : > { %372 = vperm.xlu0 %689, %v234_v13  }
  0x2f   : > { %419 = vperm.xlu1 %690, %v410_v16  }
  0x32   : > { %392 = vperm.xlu0 %689, %v236_v15   ;;  %v342_v15 = vsel %vm264_vm3, %v341_v8, %v851_v4 }
  0x33   : > { %454 = vperm.xlu1 %690, %v400_v18  }
  0x36   : > { %444 = vperm.xlu0 %689, %v399_v17  }
  0x37   : > { %481 = vperm.xlu1 %690, %v402_v19  }
  0x3b   : > { %501 = vperm.xlu1 %690, %v404_v20  }
  0x3f   : > { %528 = vperm.xlu1 %690, %v406_v21  }
  0x43   : > { %538 = vperm.xlu1 %690, %v407_v22  }
  0x47   : > { %558 = vperm.xlu1 %690, %v409_v23  }
  0x8e   : > { %v251_v26 = vpop.permute.xlu1 %250  ;;  %v269_v27 = vpop.permute.xlu0 %268 }
  0x92   : > { %v279_v28 = vpop.permute.xlu1 %278  ;;  %v239_v29 = vpop.permute.xlu0 %238 }
  0x93   : > { %v242_v30 = vsel %vm223_vm0, 0.0, %v239_v29 }
  0x94   : > { %v254_v31 = vrot.slane %v242_v30, 6  ;;  %v256_v32 = vrot.slane %v242_v30, 4  ;;  %v258_v33 = vrot.slane %v242_v30, 2 }
  0x96   : > { %v261_v36 = vsel %vm260_vm1, %v242_v30, %v254_v31  ;;  %v299_v37 = vpop.permute.xlu1 %298  ;;  %v293_v38 = vsel %vm260_vm1, %v254_v31, %v256_v32  ;;  %v273_v39 = vsel %vm260_vm1, %v258_v33, %v242_v30  ;;  %v283_v40 = vsel %vm260_vm1, %v256_v32, %v258_v33 }
  0x97   : > { %v263_v41 = vsel %vm262_vm2, %v261_v36, %v256_v32  ;;  %v274_v42 = vsel %vm262_vm2, %v273_v39, %v254_v31  ;;  %v284_v43 = vsel %vm262_vm2, %v283_v40, %v242_v30  ;;  %v294_v49 = vsel %vm262_vm2, %v293_v38, %v258_v33 }
  0x98   : > { %v265_v46 = vsel %vm264_vm3, %v263_v41, %v258_v33  ;;  %v275_v47 = vsel %vm264_vm3, %v274_v42, %v256_v32  ;;  %v285_v51 = vsel %vm264_vm3, %v284_v43, %v254_v31  ;;  %v295_v58 = vsel %vm264_vm3, %v294_v49, %v242_v30 }
  0x99   : > { %v271_v50 = vmul.f32 %v269_v27, %v265_v46  ;;  %v281_v55 = vmul.f32 %v279_v28, %v275_v47  ;;  %v301_v2 = vmul.f32 %v299_v37, %v295_v58 }
  0x9a   : > { %v326_v52 = vpop.permute.xlu1 %325 }
  0x9b   : > { %v272_v54 = vadd.f32 %v271_v50, %v251_v26  ;;  %v328_v13 = vmul.f32 %v326_v52, %v322_v7  ;;  %v401_v50 = vld [vmem:[%s1084_s3 + $0x18] sm:$0xff] }
  0x9c   : > { %v405_v52 = vld [vmem:[%s1084_s3 + $0x38] sm:$0xff] }
  0x9d   : > { %v289_v44 = vpop.permute.xlu0 %288  ;;  %v282_v60 = vadd.f32 %v281_v55, %v272_v54 }
  0x9e   : > { %v291_v61 = vmul.f32 %v289_v44, %v285_v51  ;;  %v346_v1 = vpop.permute.xlu1 %345  ;;  %v403_v51 = vld [vmem:[%s1084_s3 + $0x28] sm:$0xff] }
  0x9f   : > { %v348_v23 = vmul.f32 %v346_v1, %v342_v15 }
  0xa0   : > { %v292_v3 = vadd.f32 %v291_v61, %v282_v60 }
  0xa1   : > { %v316_v56 = vpop.permute.xlu0 %315 }
  0xa2   : > { %v302_v9 = vadd.f32 %v301_v2, %v292_v3  ;;  %v318_v10 = vmul.f32 %v316_v56, %v312_v0  ;;  %v244_v12 = vpop.permute.xlu1 %243 }
  0xa3   : > { %v247_v16 = vsel %vm224_vm4, 0.0, %v244_v12 }
  0xa4   : > { %v319_v14 = vadd.f32 %v318_v10, %v302_v9  ;;  %v351_v18 = vrot.slane %v247_v16, 6  ;;  %v353_v19 = vrot.slane %v247_v16, 4  ;;  %v355_v20 = vrot.slane %v247_v16, 2 }
  0xa5   : > { %v336_v5 = vpop.permute.xlu0 %335 }
  0xa6   : > { %v329_v21 = vadd.f32 %v328_v13, %v319_v14  ;;  %v338_v22 = vmul.f32 %v336_v5, %v332_v11  ;;  %v357_v24 = vsel %vm260_vm1, %v247_v16, %v351_v18  ;;  %v377_v26 = vsel %vm260_vm1, %v353_v19, %v355_v20  ;;  %v383_v41 = vpop.permute.xlu1 %382 }
  0xa7   : > { %v367_v27 = vsel %vm260_vm1, %v355_v20, %v247_v16  ;;  %v358_v29 = vsel %vm262_vm2, %v357_v24, %v353_v19  ;;  %v378_v4 = vsel %vm262_vm2, %v377_v26, %v247_v16  ;;  %v387_v34 = vsel %vm260_vm1, %v351_v18, %v353_v19 }
  0xa8   : > { %v339_v28 = vadd.f32 %v338_v22, %v329_v21  ;;  %v368_v30 = vsel %vm262_vm2, %v367_v27, %v351_v18  ;;  %v359_v32 = vsel %vm264_vm3, %v358_v29, %v355_v20  ;;  %v379_v37 = vsel %vm264_vm3, %v378_v4, %v351_v18 }
  0xa9   : > { %v363_v17 = vpop.permute.xlu0 %362  ;;  %v369_v33 = vsel %vm264_vm3, %v368_v30, %v353_v19  ;;  %v388_v40 = vsel %vm262_vm2, %v387_v34, %v355_v20  ;;  %v385_v43 = vmul.f32 %v383_v41, %v379_v37 }
  0xaa   : > { %v349_v35 = vadd.f32 %v348_v23, %v339_v28  ;;  %v365_v36 = vmul.f32 %v363_v17, %v359_v32  ;;  %v389_v45 = vsel %vm264_vm3, %v388_v40, %v247_v16  ;;  %v435_v55 = vpop.permute.xlu1 %434 }
  0xac   : > { %v366_v38 = vadd.f32 %v365_v36, %v349_v35 }
  0xad   : > { %v373_v31 = vpop.permute.xlu0 %372 }
  0xae   : > { %v375_v39 = vmul.f32 %v373_v31, %v369_v33  ;;  %v420_v63 = vpop.permute.xlu1 %419 }
  0xb0   : > { %v376_v44 = vadd.f32 %v375_v39, %v366_v38 }
  0xb1   : > { %v393_v42 = vpop.permute.xlu0 %392 }
  0xb2   : > { %v386_v46 = vadd.f32 %v385_v43, %v376_v44  ;;  %v395_v47 = vmul.f32 %v393_v42, %v389_v45  ;;  %v455_v10 = vpop.permute.xlu1 %454 }
  0xb4   : > { %v396_v48 = vadd.f32 %v395_v47, %v386_v46 }
  0xb5   : > { %v445_v54 = vpop.permute.xlu0 %444 }
  0xb6   : > { %v965_v49 = vmax.f32 %v396_v48, 0.0  ;;  %v482_v21 = vpop.permute.xlu1 %481 }
  0xb8   : > { %411 = vrot.lane.b32.xlu0 %v965_v49, %s756_s16  ;;  %v470_v6 = vrot.slane %v965_v49, 6  ;;  %v472_v12 = vrot.slane %v965_v49, 4  ;;  %v474_v14 = vrot.slane %v965_v49, 2 }
  0xba   : > { %v476_v15 = vsel %vm260_vm1, %v965_v49, %v470_v6  ;;  %v486_v24 = vsel %vm260_vm1, %v474_v14, %v965_v49  ;;  %v496_v30 = vsel %vm260_vm1, %v472_v12, %v474_v14  ;;  %v502_v33 = vpop.permute.xlu1 %501  ;;  %v506_v39 = vsel %vm260_vm1, %v470_v6, %v472_v12 }
  0xbb   : > { %v477_v19 = vsel %vm262_vm2, %v476_v15, %v472_v12  ;;  %v487_v4 = vsel %vm262_vm2, %v486_v24, %v470_v6  ;;  %v497_v35 = vsel %vm262_vm2, %v496_v30, %v965_v49  ;;  %v507_v42 = vsel %vm262_vm2, %v506_v39, %v474_v14 }
  0xbc   : > { %464 = vperm.xlu0 %689, %v401_v50   ;;  %v478_v28 = vsel %vm264_vm3, %v477_v19, %v474_v14  ;;  %v488_v34 = vsel %vm264_vm3, %v487_v4, %v472_v12  ;;  %v498_v40 = vsel %vm264_vm3, %v497_v35, %v470_v6  ;;  %v508_v47 = vsel %vm264_vm3, %v507_v42, %v965_v49 }
  0xbd   : > { %v484_v32 = vmul.f32 %v482_v21, %v478_v28  ;;  %v504_v45 = vmul.f32 %v502_v33, %v498_v40 }
  0xbe   : > { %v529_v43 = vpop.permute.xlu1 %528 }
  0xc0   : > { %491 = vperm.xlu0 %689, %v403_v51  }
  0xc4   : > { %511 = vperm.xlu0 %689, %v405_v52  }
  0xc8   : > { %414 = vrot.lane.b32.xlu0 %v965_v49, %s757_s15  ;;  %s213_s15 = sand.u32 1, %s745_s19  }
  0xc9   : > { %s641_s26 = sshll.u32 %s213_s15, 3  ;;  %s565_s11 = scalar_lea.sflag [#allocation3], %s213_s15 }
  0xca   : > { %s215_s6 = scalar_lea.vmem [#allocation2], %s641_s26 }
  0xcb   : > { %s578_s7 = sshll.u32 %s215_s6, 4  ;;  %s1039_s7 = int_to_ptr.vmem [resolvable:$true] %s578_s7 }
  0xcc   : > { %548 = vperm.xlu0 %689, %v408_v53   ;;  %s691_s12 = scalar_lea.vmem %s1039_s7, 128  ;;  %p698_p0 = scmp.lt.s32.totalorder %s1039_s7, %s696_s13 }
  0xcd   : > { %p692_p11 = scmp.ne.s32.totalorder %s1039_s7, %s691_s12  ;;  %p699_p1 = scmp.lt.s32.totalorder %s697_s14, %s691_s12 }
  0xcf   : > { %p693_p12 = pnand %p692_p11, %p827_p5  ;;  %p700_p2 = por %p699_p1, %p698_p0 }
  0xd1   : > { %p694_p13 = pneg %p693_p12 }
  0xd3   : > { %p701_p3 = pnand %p700_p2, %p694_p13 }
 0x12a   : > { %v412_v56 = vpop.permute.xlu0 %411 }
 0x12b   : > { %v413_v57 = vsel %vm223_vm0, 0.0, %v412_v56 }
 0x12c   : > { %v423_v58 = vrot.slane %v413_v57, 6  ;;  %v425_v59 = vrot.slane %v413_v57, 4  ;;  %v427_v60 = vrot.slane %v413_v57, 2 }
 0x12e   : > { %v429_v61 = vsel %vm260_vm1, %v413_v57, %v423_v58  ;;  %v439_v62 = vsel %vm260_vm1, %v427_v60, %v413_v57  ;;  %v449_v5 = vsel %vm260_vm1, %v425_v59, %v427_v60  ;;  %v459_v11 = vsel %vm260_vm1, %v423_v58, %v425_v59 }
 0x12f   : > { %v430_v0 = vsel %vm262_vm2, %v429_v61, %v425_v59  ;;  %v440_v2 = vsel %vm262_vm2, %v439_v62, %v423_v58  ;;  %v450_v9 = vsel %vm262_vm2, %v449_v5, %v413_v57  ;;  %v460_v18 = vsel %vm262_vm2, %v459_v11, %v427_v60 }
 0x130   : > { %v431_v1 = vsel %vm264_vm3, %v430_v0, %v427_v60  ;;  %v441_v7 = vsel %vm264_vm3, %v440_v2, %v425_v59  ;;  %v451_v16 = vsel %vm264_vm3, %v450_v9, %v423_v58  ;;  %v461_v22 = vsel %vm264_vm3, %v460_v18, %v413_v57  ;;  %v539_v59 = vpop.permute.xlu1 %538 }
 0x131   : > { %v437_v3 = vmul.f32 %v435_v55, %v431_v1  ;;  %v447_v13 = vmul.f32 %v445_v54, %v441_v7  ;;  %v457_v20 = vmul.f32 %v455_v10, %v451_v16 }
 0x133   : > { %v438_v8 = vadd.f32 %v437_v3, %v420_v63 }
 0x134   : > { %v559_v9 = vpop.permute.xlu1 %558 }
 0x135   : > { %v448_v17 = vadd.f32 %v447_v13, %v438_v8 }
 0x137   : > { %v458_v26 = vadd.f32 %v457_v20, %v448_v17 }
 0x13b   : > { %v465_v23 = vpop.permute.xlu0 %464 }
 0x13c   : > { %v467_v27 = vmul.f32 %v465_v23, %v461_v22 }
 0x13e   : > { %v468_v29 = vadd.f32 %v467_v27, %v458_v26 }
 0x13f   : > { %v492_v31 = vpop.permute.xlu0 %491 }
 0x140   : > { %v485_v36 = vadd.f32 %v484_v32, %v468_v29  ;;  %v494_v37 = vmul.f32 %v492_v31, %v488_v34 }
 0x142   : > { %v495_v41 = vadd.f32 %v494_v37, %v485_v36 }
 0x143   : > { %v512_v38 = vpop.permute.xlu0 %511 }
 0x144   : > { %v505_v52 = vadd.f32 %v504_v45, %v495_v41  ;;  %v514_v53 = vmul.f32 %v512_v38, %v508_v47 }
 0x146   : > { %v515_v62 = vadd.f32 %v514_v53, %v505_v52 }
 0x147   : > { %v415_v44 = vpop.permute.xlu0 %414 }
 0x148   : > { %v416_v46 = vsel %vm224_vm4, 0.0, %v415_v44 }
 0x149   : > { %v519_v48 = vrot.slane %v416_v46, 4  ;;  %v521_v50 = vrot.slane %v416_v46, 2  ;;  %v517_v51 = vrot.slane %v416_v46, 6 }
 0x14b   : > { %v523_v54 = vsel %vm260_vm1, %v416_v46, %v517_v51  ;;  %v533_v55 = vsel %vm260_vm1, %v521_v50, %v416_v46  ;;  %v543_v56 = vsel %vm260_vm1, %v519_v48, %v521_v50  ;;  %v553_v57 = vsel %vm260_vm1, %v517_v51, %v519_v48  ;;  %v549_v6 = vpop.permute.xlu0 %548 }
 0x14c   : > { %v524_v25 = vsel %vm262_vm2, %v523_v54, %v519_v48  ;;  %v534_v58 = vsel %vm262_vm2, %v533_v55, %v517_v51  ;;  %v544_v49 = vsel %vm262_vm2, %v543_v56, %v416_v46  ;;  %v554_v0 = vsel %vm262_vm2, %v553_v57, %v521_v50 }
 0x14d   : > { %v525_v60 = vsel %vm264_vm3, %v524_v25, %v521_v50  ;;  %v535_v61 = vsel %vm264_vm3, %v534_v58, %v519_v48  ;;  %v545_v1 = vsel %vm264_vm3, %v544_v49, %v517_v51  ;;  %v555_v5 = vsel %vm264_vm3, %v554_v0, %v416_v46 }
 0x14e   : > { %v531_v63 = vmul.f32 %v529_v43, %v525_v60  ;;  %v541_v2 = vmul.f32 %v539_v59, %v535_v61  ;;  %v551_v8 = vmul.f32 %v549_v6, %v545_v1  ;;  %v561_v10 = vmul.f32 %v559_v9, %v555_v5 }
 0x150   : > { %v532_v3 = vadd.f32 %v531_v63, %v515_v62 }
 0x152   : > { %v542_v7 = vadd.f32 %v541_v2, %v532_v3 }
 0x154   : > { %v552_v11 = vadd.f32 %v551_v8, %v542_v7 }
 0x156   : > { %v562_v12 = vadd.f32 %v561_v10, %v552_v11 }
 0x158   : > { %563 = vst [vmem:[%s215_s6] sm:$0xff] %v562_v12 }
 0x159   : > { %704 = shalt.err (!%p701_p3)
}
 0x15a   : > { %s705_s17 = scalar_lea.hbm %s1037_s10, 128  ;;  %s709_s16 = scalar_lea.hbm %s1086_s5, 256 }
 0x15b   : > { %p706_p4 = scmp.ne.s32.totalorder %s1037_s10, %s705_s17  ;;  %p710_p9 = scmp.lt.u32.totalorder %s1037_s10, %s1086_s5 }
 0x15c   : > { %p711_p10 = scmp.lt.u32.totalorder %s709_s16, %s705_s17  ;;  %p713_p12 = scmp.lt.u32.totalorder %s705_s17, %s1037_s10 }
 0x15d   : > { %p707_p7 = pnand %p706_p4, %p827_p5 }
 0x15e   : > { %p712_p11 = por %p711_p10, %p710_p9 }
 0x15f   : > { %p708_p8 = pneg %p707_p7 }
 0x160   : > { %p714_p13 = por %p713_p12, %p712_p11 }
 0x162   : > { %p715_p0 = pnand %p714_p13, %p708_p8 }
 0x164   : > { %718 = shalt.err (!%p715_p0)
}
 0x165   : > { %647 = dma.vmem_to_hbm [thread:$0]  (%p827_p5), %s1039_s7, 128, %s1037_s10, %s565_s11  }
 0x166 PF: > { %p653_p1 = scmp.ge.s32.totalorder %s753_s21, 2  ;;  %s590_s30 = sand.u32 1, %s741_s18  }
 0x167   : > { %s591_s6 = scalar_lea.sflag [#allocation3], %s590_s30 }
 0x168   : > { %p650_p2 = pnand %p653_p1, %p831_p6 }
 0x16a   : > { %736 = dma.done.wait (!%p650_p2), %s591_s6, 128  }
 0x16b   : > { %738 = vsyncadd (!%p650_p2), %s591_s6, 4294967168  ;;  %p15_p3 = scmp.ge.s32.totalorder %s814_s24, 4   ;;  %s1089_s18 = smov %s745_s19 }
 0x16c   : > { %s1090_s19 = smov %s749_s20  ;;  %s1091_s20 = smov %s825_s27 }
 0x16d   : > { %s1092_s21 = smov %s814_s24  ;;  %17 = sbr.rel (!%p15_p3) target bundleno = 3 (0x3), region = 75 }
 0x174   :  { %596 = vsyncpa [#allocation3], 1 }
 0x175   :  { %598 = vsyncpa [#allocation3 + $0x1], 1 }

</bundles_post_ra>
